<compile_context>
chip_gen: v6e
topology: v6e:2x2x1
jax: 0.10.0
libtpu: 0.0.40
codegen_flags: <defaults>
</compile_context>

<pallas_src>
import numpy as np
import jax
import jax.numpy as jnp
from jax import lax
from jax.experimental import pallas as pl
from jax.experimental.pallas import tpu as pltpu


def _bilinear_matrix(in_size: int, out_size: int) -> np.ndarray:
    """PyTorch bilinear interp (align_corners=False, antialias=False) along one axis, (out, in)."""
    # TODO(synk): if the PyTorch model ever uses antialias=True for downsampling, this matrix is wrong.
    scale = in_size / out_size
    M = np.zeros((out_size, in_size), dtype=np.float32)
    for o in range(out_size):
        src = (o + 0.5) * scale - 0.5
        src = max(src, 0.0)                       # PyTorch clamps negative src to 0
        i0 = min(int(np.floor(src)), in_size - 1)
        i1 = min(i0 + 1, in_size - 1)
        l1 = src - i0
        M[o, i0] += 1.0 - l1
        M[o, i1] += l1
    return M


def _plan_blocks(B: int, per_elem_bytes: int, block_bytes: int):
    """Choose (TB, nb): TB batch elements per grid step, nb grid steps.

    TB is sized so one x block is ~block_bytes (pipeline double-buffers it).
    If the whole batch fits, use a single step.  Otherwise keep TB a multiple
    of 8 when possible, cap it, and keep the number of steps even (megacore)
    by shrinking TB slightly rather than padding a whole extra block.
    """
    per = max(1, per_elem_bytes)
    tb = max(1, block_bytes // per)
    tb = min(tb, 512)                             # sanity cap on loop length
    if tb >= B:
        return max(B, 1), 1                       # whole batch in one step
    if tb >= 8:
        tb = (tb // 8) * 8
    nb = -(-B // tb)
    if nb > 1 and nb % 2 == 1:                    # even grid for 2-TC chips
        nb += 1
        tb = -(-B // nb)
    return tb, nb


def _make_kernel(TB: int, identity_interp: bool, inv_hw: float):
    def compute(x_ref, w_ref, mt_ref, bsq_ref, bh_ref, sq_ref, heads_ref):
        # x_ref:   (TB, C, HW)  activation block, NCHW order (channels on sublanes)
        # w_ref:   (32, C)      fused weights: rows 0:13 square conv, 16:31 side|castle|ep
        # mt_ref:  (HW, 64)     bilinear interpolation matrix (absent on 8x8 path)
        # bsq_ref: (13, 1), bh_ref: (15, 1)  float32 biases
        # Hoist bias broadcast out of the loop (broadcast_in_dim is not CSE'd).
        bsq_full = jnp.broadcast_to(bsq_ref[...], (13, 64))      # (13, 64) f32
        bh = bh_ref[...]                                         # (15, 1)  f32

        def body(b, carry):
            # One fused MXU matmul per element: (32, C) @ (C, HW) -> (32, HW), f32 acc.
            y = jnp.dot(w_ref[...], x_ref[b], preferred_element_type=jnp.float32)

            # --- square head: conv rows, then bilinear resize to 8x8 (or identity) ---
            ysq = y[0:13, :]                                      # (13, HW)
            if identity_interp:
                z = ysq                                           # HW == 64
            else:
                z = jnp.dot(ysq, mt_ref[...], preferred_element_type=jnp.float32)  # (13, 64)
            sq_ref[b] = z + bsq_full

            # --- pooled heads: spatial mean of the head rows (== linear(pool(x))) ---
            pooled = jnp.sum(y[16:31, :], axis=1, keepdims=True) * inv_hw          # (15, 1)
            heads_ref[b] = pooled + bh
            return carry

        lax.fori_loop(0, TB, body, 0)

    if identity_interp:
        def kernel(x_ref, w_ref, bsq_ref, bh_ref, sq_ref, heads_ref):
            compute(x_ref, w_ref, None, bsq_ref, bh_ref, sq_ref, heads_ref)
    else:
        def kernel(x_ref, w_ref, mt_ref, bsq_ref, bh_ref, sq_ref, heads_ref):
            compute(x_ref, w_ref, mt_ref, bsq_ref, bh_ref, sq_ref, heads_ref)
    return kernel


def board_head(x_nchw, params, compute_dtype=jnp.bfloat16, block_bytes=4 * 1024 * 1024):
    """x_nchw: (B, C, H, W) float32.
    Returns (sq (B,8,8,13), side (B,2), castle (B,4), ep (B,9)), all float32.
    compute_dtype applies to the x stream and fused weights; accumulation and
    the bias/mean epilogue stay in float32."""
    B, C, H, W = x_nchw.shape
    HW = H * W
    itemsize = np.dtype(compute_dtype).itemsize

    # NCHW consumed directly: collapsing H,W is a free (contiguous) reshape.
    x = x_nchw.reshape(B, C, HW).astype(compute_dtype)

    # Batch blocking + padding (instead of decaying TB toward 1 for awkward B).
    TB, nb = _plan_blocks(B, C * HW * itemsize, block_bytes)
    B_pad = TB * nb
    if B_pad != B:
        x = jnp.concatenate([x, jnp.zeros((B_pad - B, C, HW), compute_dtype)], axis=0)

    wsq, bsq = params['square']          # (13, C), (1, 13)
    wside, bside = params['side']        # (2, C),  (1, 2)
    wcast, bcast = params['castling']    # (4, C),  (1, 4)
    wep, bep = params['ep']              # (9, C),  (1, 9)

    # Fused, sublane-aligned weight slab: rows 0:13 square, rows 16:31 side|castle|ep.
    w_all = jnp.zeros((32, C), jnp.float32)
    w_all = w_all.at[0:13].set(wsq)
    w_all = w_all.at[16:18].set(wside)
    w_all = w_all.at[18:22].set(wcast)
    w_all = w_all.at[22:31].set(wep)
    w_all = w_all.astype(compute_dtype)

    bsq_col = bsq.reshape(13, 1).astype(jnp.float32)
    bh_col = jnp.concatenate([bside, bcast, bep], axis=1).reshape(15, 1).astype(jnp.float32)

    # Bilinear (align_corners=False) resize to 8x8 as an (HW, 64) matrix; identity on 8x8.
    identity_interp = (H == 8 and W == 8)
    in_specs = [
        pl.BlockSpec((TB, C, HW), lambda i: (i, 0, 0)),   # x block
        pl.BlockSpec((32, C), lambda i: (0, 0)),          # fused weights
    ]
    operands = [x, w_all]
    if not identity_interp:
        R = _bilinear_matrix(H, 8)                        # (8, H)
        Cm = _bilinear_matrix(W, 8)                       # (8, W)
        M = np.einsum('ah,cw->achw', R, Cm).reshape(64, HW).astype(np.float32)
        mt = jnp.asarray(M.T)                             # (HW, 64)
        in_specs.append(pl.BlockSpec((HW, 64), lambda i: (0, 0)))
        operands.append(mt)
    in_specs += [
        pl.BlockSpec((13, 1), lambda i: (0, 0)),          # square bias
        pl.BlockSpec((15, 1), lambda i: (0, 0)),          # merged head bias
    ]
    operands += [bsq_col, bh_col]

    # VMEM budget derived from the chosen block sizes (v7x has only 64 MiB/TC).
    x_block_bytes = TB * C * HW * itemsize
    out_block_bytes = TB * (13 * 64 + 16) * 4
    vmem_limit = int(min(60 << 20, max(16 << 20, 2 * (x_block_bytes + out_block_bytes) + (6 << 20))))

    flops = 2 * B_pad * 32 * C * HW
    bytes_accessed = (B_pad * C * HW * itemsize + B_pad * (13 * 64 + 15) * 4 + 32 * C * itemsize)
    if not identity_interp:
        flops += 2 * B_pad * 13 * HW * 64
        bytes_accessed += HW * 64 * 4

    sq_k, heads_k = pl.pallas_call(
        _make_kernel(TB, identity_interp, 1.0 / HW),
        out_shape=(
            jax.ShapeDtypeStruct((B_pad, 13, 64), jnp.float32),  # square logits (channels, 64 squares)
            jax.ShapeDtypeStruct((B_pad, 15, 1), jnp.float32),   # merged side|castle|ep
        ),
        grid=(nb,),
        in_specs=in_specs,
        out_specs=(
            pl.BlockSpec((TB, 13, 64), lambda i: (i, 0, 0)),
            pl.BlockSpec((TB, 15, 1), lambda i: (i, 0, 0)),
        ),
        compiler_params=pltpu.CompilerParams(
            dimension_semantics=("parallel",),
            vmem_limit_bytes=vmem_limit,
        ),
        cost_estimate=pl.CostEstimate(
            flops=int(flops), transcendentals=0, bytes_accessed=int(bytes_accessed)),
    )(*operands)

    # (B, 13, 64) -> (B, 64, 13) -> (B, 8, 8, 13)  (matches torch permute(0,2,3,1))
    sq = jnp.transpose(sq_k[:B], (0, 2, 1)).reshape(B, 8, 8, 13)
    heads = heads_k[:B, :, 0]                                    # (B, 15)
    return sq, heads[:, 0:2], heads[:, 2:6], heads[:, 6:15]


def board_head_ref(x_nchw, params):
    """Pure-JAX reference mirroring the PyTorch forward."""
    B, C, H, W = x_nchw.shape
    wsq, bsq = params['square']
    y = jnp.einsum('bchw,oc->bohw', x_nchw, wsq) + bsq.reshape(1, -1, 1, 1)   # conv 1x1
    R = jnp.asarray(_bilinear_matrix(H, 8))
    Cm = jnp.asarray(_bilinear_matrix(W, 8))
    sq = jnp.einsum('ah,cw,bohw->boac', R, Cm, y)          # bilinear to (B,13,8,8)
    sq = jnp.transpose(sq, (0, 2, 3, 1))                   # (B,8,8,13)
    pooled = jnp.mean(x_nchw, axis=(2, 3))                 # (B, C)
    wside, bside = params['side']
    wcast, bcast = params['castling']
    wep, bep = params['ep']
    return (sq,
            pooled @ wside.T + bside,
            pooled @ wcast.T + bcast,
            pooled @ wep.T + bep)


def _make_params(key, C):
    ks = jax.random.split(key, 8)
    return {
        'square':   (0.05 * jax.random.normal(ks[0], (13, C), jnp.float32),
                     0.05 * jax.random.normal(ks[1], (1, 13), jnp.float32)),
        'side':     (0.05 * jax.random.normal(ks[2], (2, C), jnp.float32),
                     0.05 * jax.random.normal(ks[3], (1, 2), jnp.float32)),
        'castling': (0.05 * jax.random.normal(ks[4], (4, C), jnp.float32),
                     0.05 * jax.random.normal(ks[5], (1, 4), jnp.float32)),
        'ep':       (0.05 * jax.random.normal(ks[6], (9, C), jnp.float32),
                     0.05 * jax.random.normal(ks[7], (1, 9), jnp.float32)),
    }


if __name__ == "__main__":
    key = jax.random.PRNGKey(0)

    # Config 1: 16x16 feature map (exercises the bilinear-resize matmul path).
    kx, kp, key = jax.random.split(key, 3)
    B, C, H, W = 2, 32, 16, 16
    x = jax.random.normal(kx, (B, C, H, W), dtype=jnp.float32)
    params = _make_params(kp, C)
    refs = board_head_ref(x, params)

    outs = jax.block_until_ready(board_head(x, params, compute_dtype=jnp.float32))
    for o, r in zip(outs, refs):
        assert o.shape == r.shape, (o.shape, r.shape)
        np.testing.assert_allclose(np.asarray(o), np.asarray(r), rtol=1e-4, atol=1e-4)

    # Default path: bf16 x/weight stream (halves HBM traffic), f32 accumulation.
    outs_bf16 = jax.block_until_ready(board_head(x, params))
    for o, r in zip(outs_bf16, refs):
        np.testing.assert_allclose(np.asarray(o), np.asarray(r), rtol=5e-2, atol=5e-2)

    # Config 2: native 8x8 board (identity-interp fast path, mt operand dropped).
    kx, kp, key = jax.random.split(key, 3)
    B, C, H, W = 4, 32, 8, 8
    x = jax.random.normal(kx, (B, C, H, W), dtype=jnp.float32)
    params = _make_params(kp, C)
    outs = jax.block_until_ready(board_head(x, params, compute_dtype=jnp.float32))
    refs = board_head_ref(x, params)
    for o, r in zip(outs, refs):
        assert o.shape == r.shape, (o.shape, r.shape)
        np.testing.assert_allclose(np.asarray(o), np.asarray(r), rtol=1e-4, atol=1e-4)

    # Config 3: odd batch -> padding, multi-step grid, runtime batch loop (TB>1).
    kx, kp, key = jax.random.split(key, 3)
    B, C, H, W = 37, 64, 8, 8
    x = jax.random.normal(kx, (B, C, H, W), dtype=jnp.float32)
    params = _make_params(kp, C)
    outs = jax.block_until_ready(
        board_head(x, params, compute_dtype=jnp.float32, block_bytes=64 * 1024))
    refs = board_head_ref(x, params)
    for o, r in zip(outs, refs):
        assert o.shape == r.shape, (o.shape, r.shape)
        np.testing.assert_allclose(np.asarray(o), np.asarray(r), rtol=1e-4, atol=1e-4)

    print("KERNEL_OK")
</pallas_src>

<mosaic_0001>
module attributes {stable_mosaic.version = 11 : i64} {
  func.func @kernel(%arg0: i32, %arg1: memref<2x32x256xf32, #tpu.memory_space<vmem>>, %arg2: memref<32x32xf32, #tpu.memory_space<vmem>>, %arg3: memref<256x64xf32, #tpu.memory_space<vmem>>, %arg4: memref<13x1xf32, #tpu.memory_space<vmem>>, %arg5: memref<15x1xf32, #tpu.memory_space<vmem>>, %arg6: memref<2x13x64xf32, #tpu.memory_space<vmem>>, %arg7: memref<2x15x1xf32, #tpu.memory_space<vmem>>) attributes {dimension_semantics = [#tpu.dimension_semantics<parallel>], iteration_bounds = array<i64: 1>, scalar_prefetch = 0 : i64, scratch_operands = 0 : i64, tpu.core_type = #tpu.core_type<tc>, window_params = [{transform_indices = @transform_0, window_bounds = array<i64: 2, 32, 256>}, {pipeline_mode = #tpu.pipeline_mode<synchronous>, transform_indices = @transform_1, window_bounds = array<i64: 32, 32>}, {pipeline_mode = #tpu.pipeline_mode<synchronous>, transform_indices = @transform_2, window_bounds = array<i64: 256, 64>}, {pipeline_mode = #tpu.pipeline_mode<synchronous>, transform_indices = @transform_3, window_bounds = array<i64: 13, 1>}, {pipeline_mode = #tpu.pipeline_mode<synchronous>, transform_indices = @transform_4, window_bounds = array<i64: 15, 1>}, {transform_indices = @transform_5, window_bounds = array<i64: 2, 13, 64>}, {transform_indices = @transform_6, window_bounds = array<i64: 2, 15, 1>}]} {
    %c0 = arith.constant 0 : index
    %c0_0 = arith.constant 0 : index
    %0 = vector.load %arg4[%c0, %c0_0] : memref<13x1xf32, #tpu.memory_space<vmem>>, vector<13x1xf32>
    %1 = vector.shape_cast %0 : vector<13x1xf32> to vector<13x1xf32>
    %2 = vector.broadcast %1 : vector<13x1xf32> to vector<13x64xf32>
    %c0_1 = arith.constant 0 : index
    %c0_2 = arith.constant 0 : index
    %3 = vector.load %arg5[%c0_1, %c0_2] : memref<15x1xf32, #tpu.memory_space<vmem>>, vector<15x1xf32>
    %c0_i32 = arith.constant 0 : i32
    %c2_i32 = arith.constant 2 : i32
    %4 = arith.addi %c0_i32, %c2_i32 : i32
    %c1_i32 = arith.constant 1 : i32
    scf.for %arg8 = %c0_i32 to %4 step %c1_i32  : i32 {
      %c0_4 = arith.constant 0 : index
      %c0_5 = arith.constant 0 : index
      %5 = vector.load %arg2[%c0_4, %c0_5] : memref<32x32xf32, #tpu.memory_space<vmem>>, vector<32x32xf32>
      %6 = arith.index_cast %arg8 : i32 to index
      %c0_6 = arith.constant 0 : index
      %c0_7 = arith.constant 0 : index
      %7 = vector.load %arg1[%6, %c0_6, %c0_7] : memref<2x32x256xf32, #tpu.memory_space<vmem>>, vector<1x32x256xf32>
      %8 = vector.shape_cast %7 : vector<1x32x256xf32> to vector<32x256xf32>
      %cst = arith.constant dense<0.000000e+00> : vector<32x256xf32>
      %9 = tpu.matmul %5, %8, %cst {dimension_numbers = #tpu.dot_dimension_numbers<[1], [0], [0], [1], [0, 0, 1, 1], [], []>} : vector<32x32xf32>, vector<32x256xf32>, vector<32x256xf32> -> vector<32x256xf32>
      %10 = vector.extract_strided_slice %9 {offsets = [0, 0], sizes = [13, 256], strides = [1, 1]} : vector<32x256xf32> to vector<13x256xf32>
      %c0_8 = arith.constant 0 : index
      %c0_9 = arith.constant 0 : index
      %11 = vector.load %arg3[%c0_8, %c0_9] : memref<256x64xf32, #tpu.memory_space<vmem>>, vector<256x64xf32>
      %cst_10 = arith.constant dense<0.000000e+00> : vector<13x64xf32>
      %12 = tpu.matmul %10, %11, %cst_10 {dimension_numbers = #tpu.dot_dimension_numbers<[1], [0], [0], [1], [0, 0, 1, 1], [], []>} : vector<13x256xf32>, vector<256x64xf32>, vector<13x64xf32> -> vector<13x64xf32>
      %13 = arith.addf %12, %2 : vector<13x64xf32>
      %14 = arith.index_cast %arg8 : i32 to index
      %c0_11 = arith.constant 0 : index
      %c0_12 = arith.constant 0 : index
      %15 = vector.load %arg6[%14, %c0_11, %c0_12] : memref<2x13x64xf32, #tpu.memory_space<vmem>>, vector<1x13x64xf32>
      %16 = vector.shape_cast %15 : vector<1x13x64xf32> to vector<13x64xf32>
      %17 = vector.shape_cast %13 : vector<13x64xf32> to vector<1x13x64xf32>
      tpu.vector_store %arg6[%14, %c0_11, %c0_12], %17 {strides = array<i32>} : memref<2x13x64xf32, #tpu.memory_space<vmem>>, vector<1x13x64xf32>,
      %18 = vector.extract_strided_slice %9 {offsets = [16, 0], sizes = [15, 256], strides = [1, 1]} : vector<32x256xf32> to vector<15x256xf32>
      %cst_13 = arith.constant dense<0.000000e+00> : vector<15xf32>
      %19 = vector.multi_reduction <add>, %18, %cst_13 [1] : vector<15x256xf32> to vector<15xf32>
      %20 = vector.shape_cast %19 : vector<15xf32> to vector<15x1xf32>
      %cst_14 = arith.constant 3.906250e-03 : f32
      %21 = vector.broadcast %cst_14 : f32 to vector<15x1xf32>
      %22 = arith.mulf %20, %21 : vector<15x1xf32>
      %23 = arith.addf %22, %3 : vector<15x1xf32>
      %24 = arith.index_cast %arg8 : i32 to index
      %c0_15 = arith.constant 0 : index
      %c0_16 = arith.constant 0 : index
      %25 = vector.load %arg7[%24, %c0_15, %c0_16] : memref<2x15x1xf32, #tpu.memory_space<vmem>>, vector<1x15x1xf32>
      %26 = vector.shape_cast %25 : vector<1x15x1xf32> to vector<15x1xf32>
      %27 = vector.shape_cast %23 : vector<15x1xf32> to vector<1x15x1xf32>
      tpu.vector_store %arg7[%24, %c0_15, %c0_16], %27 {strides = array<i32>} : memref<2x15x1xf32, #tpu.memory_space<vmem>>, vector<1x15x1xf32>,
    }
    %c2_i32_3 = arith.constant 2 : i32
    return
  }
  func.func @transform_0(%arg0: i32) -> (i32, i32, i32) {
    %c0_i32 = arith.constant 0 : i32
    %c0_i32_0 = arith.constant 0 : i32
    %c0_i32_1 = arith.constant 0 : i32
    return %arg0, %c0_i32, %c0_i32_0 : i32, i32, i32
  }
  func.func @transform_1(%arg0: i32) -> (i32, i32) {
    %c0_i32 = arith.constant 0 : i32
    %c0_i32_0 = arith.constant 0 : i32
    %c0_i32_1 = arith.constant 0 : i32
    return %c0_i32, %c0_i32_0 : i32, i32
  }
  func.func @transform_2(%arg0: i32) -> (i32, i32) {
    %c0_i32 = arith.constant 0 : i32
    %c0_i32_0 = arith.constant 0 : i32
    %c0_i32_1 = arith.constant 0 : i32
    return %c0_i32, %c0_i32_0 : i32, i32
  }
  func.func @transform_3(%arg0: i32) -> (i32, i32) {
    %c0_i32 = arith.constant 0 : i32
    %c0_i32_0 = arith.constant 0 : i32
    %c0_i32_1 = arith.constant 0 : i32
    return %c0_i32, %c0_i32_0 : i32, i32
  }
  func.func @transform_4(%arg0: i32) -> (i32, i32) {
    %c0_i32 = arith.constant 0 : i32
    %c0_i32_0 = arith.constant 0 : i32
    %c0_i32_1 = arith.constant 0 : i32
    return %c0_i32, %c0_i32_0 : i32, i32
  }
  func.func @transform_5(%arg0: i32) -> (i32, i32, i32) {
    %c0_i32 = arith.constant 0 : i32
    %c0_i32_0 = arith.constant 0 : i32
    %c0_i32_1 = arith.constant 0 : i32
    return %arg0, %c0_i32, %c0_i32_0 : i32, i32, i32
  }
  func.func @transform_6(%arg0: i32) -> (i32, i32, i32) {
    %c0_i32 = arith.constant 0 : i32
    %c0_i32_0 = arith.constant 0 : i32
    %c0_i32_1 = arith.constant 0 : i32
    return %arg0, %c0_i32, %c0_i32_0 : i32, i32, i32
  }
}

</mosaic_0001>

<bundles_post_ra>
// kernel: tpu_custom_call.1
= control target key start
LH: loop header
LB: loop body
LE: loop exit
PB: predicated region body
PF: predicated region fallthrough
CT: control target
= control target key end

     0   :  { %v374_v0 = vmov 0   ;;  %s431_s29 = smov 0   ;;  %s570_s3 = inlined_call_operand.vmem [shape: f32[13,1], index: 3, kind: input, shape index: {}]   ;;  %s571_s4 = inlined_call_operand.vmem [shape: f32[15,1], index: 4, kind: input, shape index: {}]   ;;  %s572_s0 = inlined_call_operand.vmem [shape: f32[2,32,256], index: 0, kind: input, shape index: {}]   ;;  %s573_s1 = inlined_call_operand.vmem [shape: f32[32,32], index: 1, kind: input, shape index: {}]   ;;  %s574_s2 = inlined_call_operand.vmem [shape: f32[256,64], index: 2, kind: input, shape index: {}]   ;;  %s575_s5 = inlined_call_operand.vmem [shape: f32[2,13,64], index: 5, kind: output, shape index: {0}]   ;;  %s576_s6 = inlined_call_operand.vmem [shape: f32[2,15,1], index: 6, kind: output, shape index: {1}]  }
   0x1   :  { %365 = vset.pattern.permute.xlu0 %v374_v0  ;;  %v22_v1 = vld [vmem:[%s570_s3] sm:$0xff]  ;;  %v422_v3 = vld [vmem:[%s571_s4 + $0x8] sm:$0x7f] }
   0x2   :  { %v417_v2 = vld [vmem:[%s571_s4] sm:$0xff]  ;;  %26 = vperm.xlu0 %365, %v22_v1   ;;  %v23_v4 = vld [vmem:[%s570_s3 + $0x8] sm:$0x1f] }
   0x6   :  { %31 = vperm.xlu0 %365, %v23_v4  }
  0x7d   :  { %v427_v5 = vpop.permute.xlu0 %26 }
  0x81   :  { %v429_v6 = vpop.permute.xlu0 %31 }
  0x82 LB: > { %v375_v7 = vmov 0.0   ;;  %v190_v8 = vld [vmem:[%s574_s2 + $0xf8] sm:$0xff]  ;;  %s316_s8 = sshll.u32 %s372_s29, 6  ;;  %v189_v10 = vld [vmem:[%s574_s2 + $0xf0] sm:$0xff]  ;;  %v188_v12 = vld [vmem:[%s574_s2 + $0xe8] sm:$0xff]  ;;  %vm57_vm0 = vcmask 261120   ;;  %s372_s29 = sphi %s431_s29, %s41_s29  }
  0x83   : > { %134 = vmatprep.mubr.f32.mxu0 %v375_v7  ;;  %v174_v9 = vld [vmem:[%s574_s2 + $0x78] sm:$0xff]  ;;  %317 = vmatprep.subr.mxu1 %v190_v8  ;;  %v173_v11 = vld [vmem:[%s574_s2 + $0x70] sm:$0xff]  ;;  %s48_s15 = scalar_lea.vmem %s572_s0, %s316_s8  ;;  %v172_v13 = vld [vmem:[%s574_s2 + $0x68] sm:$0xff]  ;;  %vm275_vm1 = vcmask 1046528   ;;  %s315_s30 = sshll.u32 %s372_s29, 4  ;;  %vm286_vm2 = vcmask 7168  }
  0x84   : > { %318 = vmatpush3.msra.mxu1 %v174_v9  ;;  %v56_v14 = vld [vmem:[%s48_s15 + $0x38] sm:$0xff]  ;;  %v55_v15 = vld [vmem:[%s48_s15 + $0x30] sm:$0xff]  ;;  %v54_v16 = vld [vmem:[%s48_s15 + $0x28] sm:$0xff]  ;;  %s285_s8 = scalar_lea.vmem %s576_s6, %s315_s30  ;;  %vm288_vm3 = vcmask 6144   ;;  %s267_s11 = scalar_lea.vmem %s575_s5, %s315_s30  ;;  %vm268_vm4 = vcmask 523264   ;;  %vm270_vm5 = vcmask 520192  }
  0x85   : > { %319 = vmatprep.subr.mxu1 %v189_v10  ;;  %94 = vmatprep.subr.mxu0 %v56_v14  ;;  %v53_v17 = vld [vmem:[%s48_s15 + $0x20] sm:$0xff]  ;;  %v52_v19 = vld [vmem:[%s48_s15 + $0x18] sm:$0xff]  ;;  %v51_v21 = vld [vmem:[%s48_s15 + $0x10] sm:$0xff]  ;;  %s41_s29 = sadd.s32 1, %s372_s29  }
  0x86   : > { %320 = vmatpush3.msra.mxu1 %v173_v11  ;;  %v187_v18 = vld [vmem:[%s574_s2 + $0xe0] sm:$0xff]  ;;  %95 = vmatpush1.msra.mxu0 %v55_v15  ;;  %v186_v22 = vld [vmem:[%s574_s2 + $0xd8] sm:$0xff]  ;;  %v50_v23 = vld [vmem:[%s48_s15 + $0x8] sm:$0xff]  ;;  %p38_p0 = scmp.ge.s32.totalorder %s41_s29, 2  }
  0x87   : > { %321 = vmatprep.subr.mxu1 %v188_v12  ;;  %v171_v20 = vld [vmem:[%s574_s2 + $0x60] sm:$0xff]  ;;  %96 = vmatprep.subr.mxu0 %v54_v16  ;;  %v170_v24 = vld [vmem:[%s574_s2 + $0x58] sm:$0xff]  ;;  %v185_v26 = vld [vmem:[%s574_s2 + $0xd0] sm:$0xff] }
  0x88   : > { %322 = vmatpush3.msra.mxu1 %v172_v13  ;;  %97 = vmatpush1.msra.mxu0 %v53_v17  ;;  %v49_v25 = vld [vmem:[%s48_s15] sm:$0xff]  ;;  %v169_v28 = vld [vmem:[%s574_s2 + $0x50] sm:$0xff]  ;;  %v184_v29 = vld [vmem:[%s574_s2 + $0xc8] sm:$0xff] }
  0x89   : > { %323 = vmatprep.subr.mxu1 %v187_v18  ;;  %98 = vmatprep.subr.mxu0 %v52_v19  ;;  %v42_v27 = vld [vmem:[%s573_s1] sm:$0xff]  ;;  %v168_v30 = vld [vmem:[%s574_s2 + $0x48] sm:$0xff]  ;;  %v182_v34 = vld [vmem:[%s574_s2 + $0xb8] sm:$0xff] }
  0x8a   : > { %324 = vmatpush3.msra.mxu1 %v171_v20  ;;  %99 = vmatpush1.msra.mxu0 %v51_v21  ;;  %v183_v31 = vld [vmem:[%s574_s2 + $0xc0] sm:$0xff]  ;;  %v43_v32 = vld [vmem:[%s573_s1 + $0x8] sm:$0xff]  ;;  %v166_v35 = vld [vmem:[%s574_s2 + $0x38] sm:$0xff] }
  0x8b   : > { %325 = vmatprep.subr.mxu1 %v186_v22  ;;  %100 = vmatprep.subr.mxu0 %v50_v23  ;;  %v167_v33 = vld [vmem:[%s574_s2 + $0x40] sm:$0xff]  ;;  %v181_v36 = vld [vmem:[%s574_s2 + $0xb0] sm:$0xff]  ;;  %v180_v39 = vld [vmem:[%s574_s2 + $0xa8] sm:$0xff] }
  0x8c   : > { %326 = vmatpush3.msra.mxu1 %v170_v24  ;;  %101 = vmatpush1.msra.mxu0 %v49_v25  ;;  %v44_v37 = vld [vmem:[%s573_s1 + $0x10] sm:$0xff]  ;;  %v164_v40 = vld [vmem:[%s574_s2 + $0x28] sm:$0xff]  ;;  %v179_v41 = vld [vmem:[%s574_s2 + $0xa0] sm:$0xff] }
  0x8d   : > { %327 = vmatprep.subr.mxu1 %v185_v26  ;;  %311 = vmatmul.mubr.msk.f32.vlgmr.msra.gmra.mxu0 %vm57_vm0, %v42_v27  ;;  %v165_v38 = vld [vmem:[%s574_s2 + $0x30] sm:$0xff]  ;;  %v45_v42 = vld [vmem:[%s573_s1 + $0x18] sm:$0xff]  ;;  %v163_v43 = vld [vmem:[%s574_s2 + $0x20] sm:$0xff] }
  0x8e   : > { %328 = vmatpush3.msra.mxu1 %v169_v28  ;;  %140 = vmatprep.mubr.f32.mxu0 %v375_v7  ;;  %v178_v44 = vld [vmem:[%s574_s2 + $0x98] sm:$0xff]  ;;  %v177_v46 = vld [vmem:[%s574_s2 + $0x90] sm:$0xff]  ;;  %v176_v48 = vld [vmem:[%s574_s2 + $0x88] sm:$0xff] }
  0x8f   : > { %329 = vmatprep.subr.mxu1 %v184_v29  ;;  %v162_v45 = vld [vmem:[%s574_s2 + $0x18] sm:$0xff]  ;;  %v161_v47 = vld [vmem:[%s574_s2 + $0x10] sm:$0xff]  ;;  %v160_v49 = vld [vmem:[%s574_s2 + $0x8] sm:$0xff] }
  0x90   : > { %330 = vmatpush3.msra.mxu1 %v168_v30  ;;  %v175_v50 = vld [vmem:[%s574_s2 + $0x80] sm:$0xff] }
  0x91   : > { %331 = vmatprep.subr.mxu1 %v183_v31  ;;  %312 = vmatmul.mubr.msk.f32.gmra.mxu0 %vm57_vm0, %v43_v32  ;;  %v159_v51 = vld [vmem:[%s574_s2] sm:$0xff] }
  0x92   : > { %332 = vmatpush3.msra.mxu1 %v167_v33  ;;  %146 = vmatprep.mubr.f32.mxu0 %v375_v7 }
  0x93   : > { %333 = vmatprep.subr.mxu1 %v182_v34 }
  0x94   : > { %334 = vmatpush3.msra.mxu1 %v166_v35 }
  0x95   : > { %335 = vmatprep.subr.mxu1 %v181_v36  ;;  %313 = vmatmul.mubr.msk.f32.gmra.mxu0 %vm57_vm0, %v44_v37 }
  0x96   : > { %336 = vmatpush3.msra.mxu1 %v165_v38  ;;  %152 = vmatprep.mubr.f32.mxu0 %v375_v7 }
  0x97   : > { %337 = vmatprep.subr.mxu1 %v180_v39 }
  0x98   : > { %338 = vmatpush3.msra.mxu1 %v164_v40 }
  0x99   : > { %339 = vmatprep.subr.mxu1 %v179_v41  ;;  %314 = vmatmul.mubr.msk.f32.gmra.mxu0 %vm57_vm0, %v45_v42 }
  0x9a   : > { %340 = vmatpush3.msra.mxu1 %v163_v43 }
  0x9b   : > { %341 = vmatprep.subr.mxu1 %v178_v44 }
  0x9c   : > { %342 = vmatpush3.msra.mxu1 %v162_v45 }
  0x9d   : > { %343 = vmatprep.subr.mxu1 %v177_v46 }
  0x9e   : > { %344 = vmatpush3.msra.mxu1 %v161_v47 }
  0x9f   : > { %345 = vmatprep.subr.mxu1 %v176_v48 }
  0xa0   : > { %346 = vmatpush3.msra.mxu1 %v160_v49 }
  0xa1   : > { %347 = vmatprep.subr.mxu1 %v175_v50 }
  0xa2   : > { %348 = vmatpush3.msra.mxu1 %v159_v51 }
 0x14d   : > { %v136_v52 = vpop.f32.mrf.mxu0 }
 0x14f   : > { %v138_v53 = vpop.f32.mrf.mxu0 }
 0x150   : > { %255 = vmatprep.mubr.f32.mxu1 %v138_v53 }
 0x151   : > { %v142_v54 = vpop.f32.mrf.mxu0  ;;  %256 = vmatmul.mubr.f32.vlgmr.msra.gmra.mxu1 %v136_v52 }
 0x153   : > { %v144_v55 = vpop.f32.mrf.mxu0 }
 0x154   : > { %260 = vmatprep.mubr.f32.mxu1 %v144_v55 }
 0x155   : > { %261 = vmatmul.mubr.f32.gmra.mxu1 %v142_v54  ;;  %v148_v56 = vpop.f32.mrf.mxu0 }
 0x157   : > { %v150_v57 = vpop.f32.mrf.mxu0 }
 0x158   : > { %v272_v58 = vadd.f32 %v150_v57, %v148_v56 }
 0x159   : > { %v154_v59 = vpop.f32.mrf.mxu0 }
 0x15a   : > { %v276_v60 = vsel %vm275_vm1, %v154_v59, 0.0  ;;  %273 = vadd.xlane.f32.xlu0 %v272_v58 }
 0x15b   : > { %v156_v61 = vpop.f32.mrf.mxu0 }
 0x15c   : > { %v277_v62 = vsel %vm275_vm1, %v156_v61, 0.0 }
 0x15d   : > { %v278_v63 = vadd.f32 %v277_v62, %v276_v60 }
 0x15f   : > { %279 = vadd.xlane.f32.xlu0 %v278_v63 }
 0x1e3   : > { %v274_v0 = vpop.xlane.xlu0 %273 }
 0x1e4   : > { %v281_v1 = vmul.f32 0.00390625, %v274_v0 }
 0x1e6   : > { %v283_v4 = vadd.f32 %v281_v1, %v417_v2 }
 0x1e8   : > { %287 = vst.msk [vmem:[%s285_s8] sm:$0xff] %vm286_vm2, %v283_v4  ;;  %v280_v7 = vpop.xlane.xlu0 %279 }
 0x1e9   : > { %v282_v8 = vmul.f32 0.00390625, %v280_v7 }
 0x1eb   : > { %v284_v9 = vadd.f32 %v282_v8, %v422_v3 }
 0x1ed   : > { %289 = vst.msk [vmem:[%s285_s8 + $0x8] sm:$0x7f] %vm288_vm3, %v284_v9 }
 0x211   : > { %v349_v10 = vpop.f32.mrf.mxu1 }
 0x213   : > { %v350_v11 = vpop.f32.mrf.mxu1 }
 0x214   : > { %v351_v12 = vadd.f32 %v350_v11, %v349_v10 }
 0x215   : > { %v352_v13 = vpop.f32.mrf.mxu1 }
 0x216   : > { %v258_v14 = vadd.f32 %v351_v12, %v427_v5 }
 0x217   : > { %v353_v15 = vpop.f32.mrf.mxu1 }
 0x218   : > { %269 = vst.msk [vmem:[%s267_s11] sm:$0xff] %vm268_vm4, %v258_v14  ;;  %v354_v16 = vadd.f32 %v353_v15, %v352_v13  ;;  %40 = sbr.rel (!%p38_p0) target bundleno = 130 (0x82), region = 58 }
 0x21a   : > { %v263_v17 = vadd.f32 %v354_v16, %v429_v6 }
 0x21c   : > { %271 = vst.msk [vmem:[%s267_s11 + $0x8] sm:$0x1f] %vm270_vm5, %v263_v17 }

</bundles_post_ra>
